<compile_context>
chip_gen: v7x
topology: tpu7x:2x2x1
jax: 0.10.0
libtpu: 0.0.40
codegen_flags: <defaults>
</compile_context>

<pallas_src>
import functools
import math

import jax
import jax.numpy as jnp
from jax.experimental import pallas as pl
from jax.experimental.pallas import tpu as pltpu


def _round_up(x, m):
    return ((x + m - 1) // m) * m


# ----------------------------------------------------------------------------
# In-kernel helpers
# ----------------------------------------------------------------------------
def _sigmoid(x):
    # numerically stable sigmoid; reciprocal goes to the EUP slot.
    ex = jnp.exp(-jnp.abs(x))
    r = pl.reciprocal(1.0 + ex, approx=True)
    return jnp.where(x >= 0, r, ex * r)


def _apply_act(x, act):
    if act == "silu":
        return x * _sigmoid(x)
    if act == "relu":
        return jnp.maximum(x, 0.0)
    if act == "sigmoid":
        return _sigmoid(x)
    return x


# ----------------------------------------------------------------------------
# Pallas kernels
# ----------------------------------------------------------------------------
def _matmul_kernel(x_ref, w_ref, b_ref, o_ref, *, act):
    # x: (TM, K) bf16   w: (K, N) bf16   b: (1, N) f32   o: (TM, N) bf16/f32
    acc = jnp.dot(x_ref[...], w_ref[...], preferred_element_type=jnp.float32)
    acc = acc + b_ref[...]
    o_ref[...] = _apply_act(acc, act).astype(o_ref.dtype)


def _dwconv_se_kernel(x_ref, w_ref, b_ref, w1_ref, b1_ref, w2_ref, b2_ref,
                      o_ref, g_ref, *, k, stride, Wo, Hh, TH, inv_hw, act):
    # x:  (1, P*Hh, Wh, C) bf16   (phase-stacked, spatially padded image)
    # w:  (k*k, C) f32   b: (1, C) f32
    # w1: (C, Csqp) bf16  b1: (1, Csqp) f32   w2: (Csqp, C) bf16  b2: (1, C) f32
    # o:  (1, TH, Wo, C) bf16  (row block)    g: (1, 1, C) f32  (SE gate / pool acc)
    rb = pl.program_id(1)
    nrb = pl.num_programs(1)
    C = o_ref.shape[3]
    r0 = rb * TH

    acc = jnp.zeros((TH, Wo, C), jnp.float32)
    for dy in range(k):
        for dx in range(k):
            if stride == 1:
                ph, ry, rx = 0, dy, dx
            else:
                ph = (dy % 2) * 2 + (dx % 2)
                ry, rx = dy // 2, dx // 2
            tap = x_ref[0, pl.ds(ph * Hh + ry + r0, TH), rx:rx + Wo, :]
            wt = w_ref[dy * k + dx: dy * k + dx + 1, :]          # (1, C)
            acc = acc + tap.astype(jnp.float32) * wt
    acc = acc + b_ref[0:1, :]
    y = _apply_act(acc, act)                                      # (TH, Wo, C) f32
    o_ref[0] = y.astype(o_ref.dtype)

    @pl.when(rb == 0)
    def _():
        g_ref[...] = jnp.zeros_like(g_ref)

    g_ref[...] += jnp.sum(y, axis=(0, 1), keepdims=True)

    @pl.when(rb == nrb - 1)
    def _():
        pooled = g_ref[0] * inv_hw                                # (1, C)
        p8 = jnp.broadcast_to(pooled, (8, C)).astype(jnp.bfloat16)
        h1 = jnp.dot(p8, w1_ref[...],
                     preferred_element_type=jnp.float32) + b1_ref[...]
        h1 = _apply_act(h1, "silu")
        g = jnp.dot(h1.astype(jnp.bfloat16), w2_ref[...],
                    preferred_element_type=jnp.float32) + b2_ref[...]
        g_ref[0] = _apply_act(g, "sigmoid")[0:1, :]


def _proj_kernel(x_ref, s_ref, w_ref, b_ref, o_ref):
    # x: (1, THW, Cexp) bf16   s: (1, 1, Cexp) f32   w: (Cexp, Cout) bf16
    xs = x_ref[0] * s_ref[0].astype(jnp.bfloat16)
    acc = jnp.dot(xs, w_ref[...], preferred_element_type=jnp.float32) + b_ref[...]
    o_ref[0] = acc.astype(o_ref.dtype)


def _proj_res_kernel(x_ref, s_ref, w_ref, b_ref, r_ref, o_ref):
    xs = x_ref[0] * s_ref[0].astype(jnp.bfloat16)
    acc = jnp.dot(xs, w_ref[...], preferred_element_type=jnp.float32) + b_ref[...]
    o_ref[0] = (acc + r_ref[0].astype(jnp.float32)).astype(o_ref.dtype)


def _tail_kernel(x_ref, hw_ref, hb_ref, w1_ref, b1_ref, w2_ref, b2_ref,
                 w3_ref, b3_ref, feat_ref, x4_ref, logit_ref, *, n_batch, inv_hw):
    # Fused: head 1x1 conv (BN+SiLU) -> global avgpool -> fc1(relu) -> fc2(relu) -> fc3
    pooled_rows = []
    for n in range(n_batch):
        h = jnp.dot(x_ref[n], hw_ref[...],
                    preferred_element_type=jnp.float32) + hb_ref[...]
        h = _apply_act(h, "silu")                                 # (HW, 1280) f32
        feat_ref[n] = h
        pooled_rows.append(jnp.sum(h, axis=0, keepdims=True) * inv_hw)
    pooled = jnp.concatenate(pooled_rows, axis=0)                 # (N, 1280)
    x4_ref[...] = pooled
    z = jnp.dot(pooled.astype(jnp.bfloat16), w1_ref[...],
                preferred_element_type=jnp.float32) + b1_ref[...]
    z = jnp.maximum(z, 0.0)
    z = jnp.dot(z.astype(jnp.bfloat16), w2_ref[...],
                preferred_element_type=jnp.float32) + b2_ref[...]
    z = jnp.maximum(z, 0.0)
    z = jnp.dot(z.astype(jnp.bfloat16), w3_ref[...],
                preferred_element_type=jnp.float32) + b3_ref[...]
    logit_ref[...] = z


# ----------------------------------------------------------------------------
# Tiling helpers
# ----------------------------------------------------------------------------
def _tile_rows(M):
    """Pick (Mp, TM): row tile that divides Mp, preferring >=2 grid steps."""
    Mp = _round_up(M, 8)
    best_full, best_multi = None, None
    for tm in range(min(512, Mp), 7, -8):
        if Mp % tm == 0:
            if best_full is None:
                best_full = tm
            if Mp // tm >= 2:
                best_multi = tm
                break
    tm = best_multi if best_multi is not None else (best_full or Mp)
    if Mp // tm > 128 and tm < 128:       # pathological: pad instead of tiny tiles
        Mp = _round_up(M, 256)
        tm = 256
    return Mp, tm


def _pick_hw_tile(HW, cap=512):
    if HW <= cap:
        return HW
    for t in range(cap, 7, -8):
        if HW % t == 0:
            return t
    return HW


def _pick_th(Ho, Wo, C, budget=32768):
    best = 1
    for th in range(1, Ho + 1):
        if Ho % th == 0 and th * Wo * C <= budget:
            best = th
    return best


# ----------------------------------------------------------------------------
# Pallas wrappers
# ----------------------------------------------------------------------------
def matmul_bias_act(x, w, b, act="none", out_dtype=jnp.bfloat16):
    """y = act(x @ w + b).  x:(M,K)  w:(K,N)  b:(N,) -> out_dtype."""
    M, K = x.shape
    Nc = w.shape[1]
    Mp, TM = _tile_rows(M)
    xb = x.astype(jnp.bfloat16)
    if Mp != M:
        xb = jnp.pad(xb, ((0, Mp - M), (0, 0)))
    wb = w.astype(jnp.bfloat16)
    bb = b.reshape(1, Nc).astype(jnp.float32)
    flops = 2 * Mp * K * Nc
    bytes_acc = Mp * K * 2 + K * Nc * 2 + Mp * Nc * 2
    out = pl.pallas_call(
        functools.partial(_matmul_kernel, act=act),
        out_shape=jax.ShapeDtypeStruct((Mp, Nc), out_dtype),
        grid=(Mp // TM,),
        in_specs=[
            pl.BlockSpec((TM, K), lambda i: (i, 0)),
            pl.BlockSpec((K, Nc), lambda i: (0, 0)),
            pl.BlockSpec((1, Nc), lambda i: (0, 0)),
        ],
        out_specs=pl.BlockSpec((TM, Nc), lambda i: (i, 0)),
        compiler_params=pltpu.CompilerParams(dimension_semantics=("parallel",)),
        cost_estimate=pl.CostEstimate(flops=int(flops), transcendentals=0,
                                      bytes_accessed=int(bytes_acc)),
    )(xb, wb, bb)
    return out[:M, :] if Mp != M else out


def extract_patches(x, k, stride, pad):
    """Im2col in plain JAX (only used for the 3x3 stem conv on 3 channels)."""
    N, H, W, C = x.shape
    xp = jnp.pad(x, ((0, 0), (pad, pad), (pad, pad), (0, 0)))
    Ho = (H + 2 * pad - k) // stride + 1
    Wo = (W + 2 * pad - k) // stride + 1
    rows = []
    for dy in range(k):
        cols = []
        for dx in range(k):
            cols.append(xp[:, dy:dy + Ho * stride:stride,
                           dx:dx + Wo * stride:stride, :])
        rows.append(jnp.stack(cols, axis=3))            # (N,Ho,Wo,k,C)
    patches = jnp.stack(rows, axis=3)                   # (N,Ho,Wo,k,k,C)
    return patches, Ho, Wo


def conv2d_bn_act(x, w, scale, bias, stride, act):
    """Standard conv (PyTorch weight layout (Cout,Cin,k,k)), BN folded. bf16 out."""
    Cout, Cin, k, _ = w.shape
    N, H, W, _ = x.shape
    if k == 1 and stride == 1:
        wm = w[:, :, 0, 0].T * scale[None, :]
        out = matmul_bias_act(x.reshape(N * H * W, Cin), wm, bias, act)
        return out.reshape(N, H, W, Cout)
    pad = (k - 1) // 2
    patches, Ho, Wo = extract_patches(x, k, stride, pad)
    M = N * Ho * Wo
    pm = patches.reshape(M, k * k * Cin)
    wm = jnp.transpose(w, (2, 3, 1, 0)).reshape(k * k * Cin, Cout) * scale[None, :]
    out = matmul_bias_act(pm, wm, bias, act)
    return out.reshape(N, Ho, Wo, Cout)


def dwconv_se(x, dwp, se1, se2, stride, act="silu"):
    """Depthwise conv (BN folded, SiLU) fused with the SE squeeze.

    Returns (activated map bf16 (N,Ho,Wo,C), SE gate f32 (N,1,C)).  The padded
    (phase-decomposed for stride 2) bf16 NHWC map is read once per batch
    element; the output is computed row-block by row-block (grid axis) so the
    f32 accumulator stays in vregs, and the two tiny SE FCs run in the last
    row-block step (no second HBM pass over the expanded map)."""
    N, H, W, C = x.shape
    k = dwp["w"].shape[-1]
    pad = (k - 1) // 2
    Ho = (H + 2 * pad - k) // stride + 1
    Wo = (W + 2 * pad - k) // stride + 1
    wm = (jnp.transpose(dwp["w"][:, 0], (1, 2, 0)).reshape(k * k, C)
          * dwp["scale"][None, :]).astype(jnp.float32)
    bb = dwp["bias"].reshape(1, C).astype(jnp.float32)

    if stride == 1:
        Hh, Wh, P = H + 2 * pad, W + 2 * pad, 1
        xph = jnp.pad(x, ((0, 0), (pad, pad), (pad, pad), (0, 0)))
    else:  # stride == 2 -> four spatial phases, contiguous slices in-kernel
        Hh = Ho + (k - 1) // 2
        Wh = Wo + (k - 1) // 2
        xpad = jnp.pad(x, ((0, 0),
                           (pad, 2 * Hh - H - pad),
                           (pad, 2 * Wh - W - pad),
                           (0, 0)))
        phases = [xpad[:, py::2, px::2, :][:, :Hh, :Wh, :]
                  for py in range(2) for px in range(2)]
        xph = jnp.concatenate(phases, axis=1)           # (N, 4*Hh, Wh, C)
        P = 4

    Csq = se1["w"].shape[1]
    Csqp = _round_up(Csq, 128)
    w1 = jnp.pad(se1["w"], ((0, 0), (0, Csqp - Csq))).astype(jnp.bfloat16)
    b1 = jnp.pad(se1["b"], (0, Csqp - Csq)).reshape(1, Csqp).astype(jnp.float32)
    w2 = jnp.pad(se2["w"], ((0, Csqp - Csq), (0, 0))).astype(jnp.bfloat16)
    b2 = se2["b"].reshape(1, C).astype(jnp.float32)

    TH = _pick_th(Ho, Wo, C)
    nrb = Ho // TH

    out, gate = pl.pallas_call(
        functools.partial(_dwconv_se_kernel, k=k, stride=stride, Wo=Wo, Hh=Hh,
                          TH=TH, inv_hw=1.0 / float(Ho * Wo), act=act),
        out_shape=(jax.ShapeDtypeStruct((N, Ho, Wo, C), jnp.bfloat16),
                   jax.ShapeDtypeStruct((N, 1, C), jnp.float32)),
        grid=(N, nrb),
        in_specs=[
            pl.BlockSpec((1, P * Hh, Wh, C), lambda n, rb: (n, 0, 0, 0)),
            pl.BlockSpec((k * k, C), lambda n, rb: (0, 0)),
            pl.BlockSpec((1, C), lambda n, rb: (0, 0)),
            pl.BlockSpec((C, Csqp), lambda n, rb: (0, 0)),
            pl.BlockSpec((1, Csqp), lambda n, rb: (0, 0)),
            pl.BlockSpec((Csqp, C), lambda n, rb: (0, 0)),
            pl.BlockSpec((1, C), lambda n, rb: (0, 0)),
        ],
        out_specs=(pl.BlockSpec((1, TH, Wo, C), lambda n, rb: (n, rb, 0, 0)),
                   pl.BlockSpec((1, 1, C), lambda n, rb: (n, 0, 0))),
        compiler_params=pltpu.CompilerParams(
            dimension_semantics=("parallel", "arbitrary")),
    )(xph, wm, bb, w1, b1, w2, b2)
    return out, gate


def proj_conv_fused(x, gate, w, scale, bias, residual=None):
    """Fused: (x * SE-gate) @ W_proj (1x1 conv, BN folded) [+ residual]. bf16 out."""
    N, H, W, Cexp = x.shape
    Cout = w.shape[0]
    HW = H * W
    THW = _pick_hw_tile(HW)
    xf = x.reshape(N, HW, Cexp)                                    # bf16
    wm = (w[:, :, 0, 0].T * scale[None, :]).astype(jnp.bfloat16)   # (Cexp, Cout)
    bb = bias.reshape(1, Cout).astype(jnp.float32)

    in_specs = [
        pl.BlockSpec((1, THW, Cexp), lambda n, i: (n, i, 0)),
        pl.BlockSpec((1, 1, Cexp), lambda n, i: (n, 0, 0)),
        pl.BlockSpec((Cexp, Cout), lambda n, i: (0, 0)),
        pl.BlockSpec((1, Cout), lambda n, i: (0, 0)),
    ]
    args = [xf, gate, wm, bb]
    if residual is not None:
        rf = residual.reshape(N, HW, Cout)                         # bf16
        in_specs.append(pl.BlockSpec((1, THW, Cout), lambda n, i: (n, i, 0)))
        args.append(rf)
        kern = _proj_res_kernel
    else:
        kern = _proj_kernel

    flops = 2 * N * HW * Cexp * Cout
    bytes_acc = N * HW * Cexp * 2 + Cexp * Cout * 2 + N * HW * Cout * 2
    out = pl.pallas_call(
        kern,
        out_shape=jax.ShapeDtypeStruct((N, HW, Cout), jnp.bfloat16),
        grid=(N, HW // THW),
        in_specs=in_specs,
        out_specs=pl.BlockSpec((1, THW, Cout), lambda n, i: (n, i, 0)),
        compiler_params=pltpu.CompilerParams(
            dimension_semantics=("parallel", "parallel")),
        cost_estimate=pl.CostEstimate(flops=int(flops), transcendentals=0,
                                      bytes_accessed=int(bytes_acc)),
    )(*args)
    return out.reshape(N, H, W, Cout)


def fused_tail(x, head, fc1, fc2, fc3):
    """Head 1x1 conv (BN+SiLU) -> avgpool -> fc1(relu) -> fc2(relu) -> fc3,
    all in one pallas_call with weights resident in VMEM."""
    N, H, W, Cin = x.shape
    HW = H * W
    x3 = x.reshape(N, HW, Cin)                                     # bf16
    hw_m = (head["w"][:, :, 0, 0].T * head["scale"][None, :]).astype(jnp.bfloat16)
    hb = head["bias"].reshape(1, -1).astype(jnp.float32)
    Chead = hw_m.shape[1]
    nc = fc3["w"].shape[1]
    NCp = _round_up(nc, 128)
    w1 = fc1["w"].astype(jnp.bfloat16)
    b1 = fc1["b"].reshape(1, -1).astype(jnp.float32)
    w2 = fc2["w"].astype(jnp.bfloat16)
    b2 = fc2["b"].reshape(1, -1).astype(jnp.float32)
    w3 = jnp.pad(fc3["w"], ((0, 0), (0, NCp - nc))).astype(jnp.bfloat16)
    b3 = jnp.pad(fc3["b"], (0, NCp - nc)).reshape(1, NCp).astype(jnp.float32)

    feat, x4, logits = pl.pallas_call(
        functools.partial(_tail_kernel, n_batch=N, inv_hw=1.0 / float(HW)),
        out_shape=(jax.ShapeDtypeStruct((N, HW, Chead), jnp.float32),
                   jax.ShapeDtypeStruct((N, Chead), jnp.float32),
                   jax.ShapeDtypeStruct((N, NCp), jnp.float32)),
        grid=(1,),
        in_specs=[
            pl.BlockSpec((N, HW, Cin), lambda i: (0, 0, 0)),
            pl.BlockSpec(hw_m.shape, lambda i: (0, 0)),
            pl.BlockSpec(hb.shape, lambda i: (0, 0)),
            pl.BlockSpec(w1.shape, lambda i: (0, 0)),
            pl.BlockSpec(b1.shape, lambda i: (0, 0)),
            pl.BlockSpec(w2.shape, lambda i: (0, 0)),
            pl.BlockSpec(b2.shape, lambda i: (0, 0)),
            pl.BlockSpec(w3.shape, lambda i: (0, 0)),
            pl.BlockSpec(b3.shape, lambda i: (0, 0)),
        ],
        out_specs=(pl.BlockSpec((N, HW, Chead), lambda i: (0, 0, 0)),
                   pl.BlockSpec((N, Chead), lambda i: (0, 0)),
                   pl.BlockSpec((N, NCp), lambda i: (0, 0))),
        compiler_params=pltpu.CompilerParams(dimension_semantics=("arbitrary",)),
    )(x3, hw_m, hb, w1, b1, w2, b2, w3, b3)
    features = jnp.transpose(feat.reshape(N, H, W, Chead), (0, 3, 1, 2))
    return features, x4, logits[:, :nc]


# ----------------------------------------------------------------------------
# EfficientNet-B0 configuration and deterministic parameter init
# ----------------------------------------------------------------------------
# (expand_ratio, kernel, stride, in_ch, out_ch, num_layers)
B0_CFG = [
    (1, 3, 1, 32, 16, 1),
    (6, 3, 2, 16, 24, 2),
    (6, 5, 2, 24, 40, 2),
    (6, 3, 2, 40, 80, 3),
    (6, 5, 1, 80, 112, 3),
    (6, 5, 2, 112, 192, 4),
    (6, 3, 1, 192, 320, 1),
]
_BN_EPS = 1e-3


def _fold_bn(keys, c):
    gamma = 1.0 + 0.05 * jax.random.normal(next(keys), (c,), jnp.float32)
    beta = 0.05 * jax.random.normal(next(keys), (c,), jnp.float32)
    mean = 0.05 * jax.random.normal(next(keys), (c,), jnp.float32)
    var = 1.0 + 0.05 * jnp.abs(jax.random.normal(next(keys), (c,), jnp.float32))
    scale = gamma / jnp.sqrt(var + _BN_EPS)
    bias = beta - mean * scale
    return scale, bias


def _conv_bn(keys, cout, cin, k):
    w = jax.random.normal(next(keys), (cout, cin, k, k), jnp.float32) / math.sqrt(cin * k * k)
    scale, bias = _fold_bn(keys, cout)
    return {"w": w, "scale": scale, "bias": bias}


def _dw_bn(keys, c, k):
    w = jax.random.normal(next(keys), (c, 1, k, k), jnp.float32) / math.sqrt(k * k)
    scale, bias = _fold_bn(keys, c)
    return {"w": w, "scale": scale, "bias": bias}


def _linear(keys, cin, cout):
    # stored as (cin, cout) so that y = x @ w + b  (== PyTorch x @ W.T + b)
    w = jax.random.normal(next(keys), (cin, cout), jnp.float32) / math.sqrt(cin)
    b = 0.01 * jax.random.normal(next(keys), (cout,), jnp.float32)
    return {"w": w, "b": b}


def init_params(key, num_classes=10):
    # TODO(synk): pretrained ImageNet weights cannot be loaded here; deterministic
    # random weights with the same architecture are used instead.
    keys = iter(jax.random.split(key, 600))
    p = {"stem": _conv_bn(keys, 32, 3, 3)}
    blocks = []
    for (t, k, s, cin, cout, n) in B0_CFG:
        for i in range(n):
            bcin = cin if i == 0 else cout
            bs = s if i == 0 else 1
            cexp = bcin * t
            csq = max(1, bcin // 4)
            bp = {"cfg": (t, k, bs, bcin, cout)}
            if t != 1:
                bp["expand"] = _conv_bn(keys, cexp, bcin, 1)
            bp["dw"] = _dw_bn(keys, cexp, k)
            bp["se1"] = _linear(keys, cexp, csq)
            bp["se2"] = _linear(keys, csq, cexp)
            bp["proj"] = _conv_bn(keys, cout, cexp, 1)
            blocks.append(bp)
    p["blocks"] = blocks
    p["head"] = _conv_bn(keys, 1280, 320, 1)
    p["fc1"] = _linear(keys, 1280, 512)
    p["fc2"] = _linear(keys, 512, 256)
    p["fc3"] = _linear(keys, 256, num_classes)
    return p


# ----------------------------------------------------------------------------
# Forward pass:  (features, x4, logits)  -- mirrors Efficientnet_transfer.forward
# ----------------------------------------------------------------------------
def efficientnet_transfer_forward(params, x_nchw):
    # layout: input NCHW (PyTorch) -> internal NHWC, bf16-resident activations
    x = jnp.transpose(x_nchw, (0, 2, 3, 1)).astype(jnp.float32)

    st = params["stem"]
    x = conv2d_bn_act(x, st["w"], st["scale"], st["bias"], stride=2, act="silu")

    for bp in params["blocks"]:
        t, k, s, cin, cout = bp["cfg"]
        inp = x
        h = x
        if t != 1:
            e = bp["expand"]
            h = conv2d_bn_act(h, e["w"], e["scale"], e["bias"], 1, "silu")
        d = bp["dw"]
        # fused depthwise conv + BN + SiLU + SE squeeze (pool -> fc1 -> fc2)
        h, gate = dwconv_se(h, d, bp["se1"], bp["se2"], s, "silu")
        pr = bp["proj"]
        # stochastic depth is identity at eval time
        res = inp if (s == 1 and cin == cout) else None
        x = proj_conv_fused(h, gate, pr["w"], pr["scale"], pr["bias"], residual=res)

    # TODO(synk): nn.Dropout(0.2) layers are identity here (eval/inference mode).
    features, x4, logits = fused_tail(x, params["head"], params["fc1"],
                                      params["fc2"], params["fc3"])
    return features, x4, logits


# ----------------------------------------------------------------------------
if __name__ == "__main__":
    key = jax.random.PRNGKey(0)
    pkey, xkey = jax.random.split(key)
    num_classes = 10
    params = init_params(pkey, num_classes=num_classes)

    # Small input: batch=2, 3 channels, 32x32 (downsamples by 32x -> 1x1 features)
    x = jax.random.normal(xkey, (2, 3, 32, 32), jnp.float32)

    features, x4, logits = efficientnet_transfer_forward(params, x)
    jax.block_until_ready((features, x4, logits))

    assert features.shape == (2, 1280, 1, 1), features.shape
    assert x4.shape == (2, 1280), x4.shape
    assert logits.shape == (2, num_classes), logits.shape
    assert bool(jnp.all(jnp.isfinite(logits)))
    assert bool(jnp.all(jnp.isfinite(x4)))
    print("KERNEL_OK")
</pallas_src>

<mosaic_0001>
module attributes {stable_mosaic.version = 11 : i64} {
  func.func @_matmul_kernel(%arg0: i32, %arg1: memref<256x27xbf16, #tpu.memory_space<vmem>>, %arg2: memref<27x32xbf16, #tpu.memory_space<vmem>>, %arg3: memref<1x32xf32, #tpu.memory_space<vmem>>, %arg4: memref<256x32xbf16, #tpu.memory_space<vmem>>) attributes {dimension_semantics = [#tpu.dimension_semantics<parallel>], iteration_bounds = array<i64: 2>, scalar_prefetch = 0 : i64, scratch_operands = 0 : i64, tpu.core_type = #tpu.core_type<tc>, window_params = [{transform_indices = @transform_0, window_bounds = array<i64: 256, 27>}, {pipeline_mode = #tpu.pipeline_mode<synchronous>, transform_indices = @transform_1, window_bounds = array<i64: 27, 32>}, {pipeline_mode = #tpu.pipeline_mode<synchronous>, transform_indices = @transform_2, window_bounds = array<i64: 1, 32>}, {transform_indices = @transform_3, window_bounds = array<i64: 256, 32>}]} {
    %c0 = arith.constant 0 : index
    %c0_0 = arith.constant 0 : index
    %0 = vector.load %arg1[%c0, %c0_0] : memref<256x27xbf16, #tpu.memory_space<vmem>>, vector<256x27xbf16>
    %c0_1 = arith.constant 0 : index
    %c0_2 = arith.constant 0 : index
    %1 = vector.load %arg2[%c0_1, %c0_2] : memref<27x32xbf16, #tpu.memory_space<vmem>>, vector<27x32xbf16>
    %cst = arith.constant dense<0.000000e+00> : vector<256x32xf32>
    %2 = tpu.matmul %0, %1, %cst {dimension_numbers = #tpu.dot_dimension_numbers<[1], [0], [0], [1], [0, 0, 1, 1], [], []>} : vector<256x27xbf16>, vector<27x32xbf16>, vector<256x32xf32> -> vector<256x32xf32>
    %c0_3 = arith.constant 0 : index
    %c0_4 = arith.constant 0 : index
    %3 = vector.load %arg3[%c0_3, %c0_4] : memref<1x32xf32, #tpu.memory_space<vmem>>, vector<1x32xf32>
    %4 = vector.broadcast %3 : vector<1x32xf32> to vector<256x32xf32>
    %5 = arith.addf %2, %4 : vector<256x32xf32>
    %6 = math.absf %5 : vector<256x32xf32>
    %cst_5 = arith.constant 0.000000e+00 : f32
    %7 = vector.broadcast %cst_5 : f32 to vector<256x32xf32>
    %8 = arith.subf %7, %6 : vector<256x32xf32>
    %9 = math.exp %8 : vector<256x32xf32>
    %cst_6 = arith.constant 1.000000e+00 : f32
    %10 = vector.broadcast %cst_6 : f32 to vector<256x32xf32>
    %11 = arith.addf %10, %9 : vector<256x32xf32>
    %12 = tpu.reciprocal %11 {approx = true} : vector<256x32xf32> -> vector<256x32xf32>
    %cst_7 = arith.constant 0.000000e+00 : f32
    %13 = vector.broadcast %cst_7 : f32 to vector<256x32xf32>
    %14 = arith.cmpf oge, %5, %13 : vector<256x32xf32>
    %15 = arith.mulf %9, %12 : vector<256x32xf32>
    %16 = arith.select %14, %12, %15 : vector<256x32xi1>, vector<256x32xf32>
    %17 = arith.mulf %5, %16 : vector<256x32xf32>
    %18 = arith.truncf %17 : vector<256x32xf32> to vector<256x32xbf16>
    %c0_8 = arith.constant 0 : index
    %c0_9 = arith.constant 0 : index
    %19 = vector.load %arg4[%c0_8, %c0_9] : memref<256x32xbf16, #tpu.memory_space<vmem>>, vector<256x32xbf16>
    tpu.vector_store %arg4[%c0_8, %c0_9], %18 {strides = array<i32>} : memref<256x32xbf16, #tpu.memory_space<vmem>>, vector<256x32xbf16>,
    return
  }
  func.func @transform_0(%arg0: i32) -> (i32, i32) {
    %c0_i32 = arith.constant 0 : i32
    %c0_i32_0 = arith.constant 0 : i32
    return %arg0, %c0_i32 : i32, i32
  }
  func.func @transform_1(%arg0: i32) -> (i32, i32) {
    %c0_i32 = arith.constant 0 : i32
    %c0_i32_0 = arith.constant 0 : i32
    %c0_i32_1 = arith.constant 0 : i32
    return %c0_i32, %c0_i32_0 : i32, i32
  }
  func.func @transform_2(%arg0: i32) -> (i32, i32) {
    %c0_i32 = arith.constant 0 : i32
    %c0_i32_0 = arith.constant 0 : i32
    %c0_i32_1 = arith.constant 0 : i32
    return %c0_i32, %c0_i32_0 : i32, i32
  }
  func.func @transform_3(%arg0: i32) -> (i32, i32) {
    %c0_i32 = arith.constant 0 : i32
    %c0_i32_0 = arith.constant 0 : i32
    return %arg0, %c0_i32 : i32, i32
  }
}

</mosaic_0001>

<bundles_post_ra>
// kernel: tpu_custom_call.1
= control target key start
LH: loop header
LB: loop body
LE: loop exit
PB: predicated region body
PF: predicated region fallthrough
CT: control target
= control target key end

     0   :  { %s1415_s12 = smov 0   ;;  %s1920_s0 = inlined_call_operand.vmem [shape: bf16[512,27], index: 0, kind: input, shape index: {}]   ;;  %s1921_s1 = inlined_call_operand.vmem [shape: bf16[27,32], index: 1, kind: input, shape index: {}]   ;;  %s1922_s2 = inlined_call_operand.vmem [shape: f32[1,32], index: 2, kind: input, shape index: {}]   ;;  %s1923_s3 = inlined_call_operand.vmem [shape: bf16[512,32], index: 3, kind: output, shape index: {}]  }
   0x1 LB: > { %s1063_s13 = sadd.s32 4294967295, %s1392_s12   ;;  %p1067_p0 = scmp.ge.s32.totalorder %s1392_s12, 1  ;;  %s1392_s12 = sphi %s1415_s12, %s13_s12  }
   0x2   : > { %p138_p1 = scmp.lt.s32.totalorder %s1392_s12, 3 }
   0x4   : > { %p139_p2 = pnand %p1067_p0, %p138_p1 }
   0x5   : > { %v1240_v0 = vld [vmem:[%s1921_s1] sm:$0xff] (!%p139_p2)   ;;  %vm358_vm0 = vcmask (!%p139_p2), 1044480   ;;  %v1241_v1 = vld [vmem:[%s1921_s1 + $0x8] sm:$0x3f] (!%p139_p2)   ;;  %vm359_vm1 = vcmask (!%p139_p2), 1045504   ;;  %s1068_s18 = sshll.u32 (!%p139_p2), %s1063_s13, 5 }
   0x6   : > { %142 = sbr.rel (%p139_p2) target bundleno = 344 (0x158), region = 32  ;;  %1191 = vmatprep.subr.bf16.mxu0 (!%p139_p2), %v1240_v0  ;;  %1227 = vmatprep.subr.bf16.mxu1 (!%p139_p2), %v1240_v0  ;;  %v1394_v2 = vmov (!%p139_p2), 65535   ;;  %p163_p3 = scmp.lt.s32.totalorder (!%p139_p2), %s1068_s18, 63  ;;  %vm309_vm2 = vcmask (!%p139_p2), 220160   ;;  %v1474_v22 = vld [vmem:[%s1922_s2] ss:$0 sm:$0xff] (!%p139_p2) }
   0x7   : > { %1192 = vmatpush3.bf16.msra.mxu0 (!%p139_p2), %v1240_v0  ;;  %1229 = vmatpush3.bf16.msra.mxu1 (!%p139_p2), %v1240_v0  ;;  %v360_v3 = vsel (!%p139_p2), %vm358_vm0, 4294967295, %v1394_v2  ;;  %vm974_vm6 = vcmask (!%p139_p2), 257024  }
   0x8   : > { %v361_v4 = vsel (!%p139_p2), %vm359_vm1, %v360_v3, 0 }
   0x9   : > { %v363_v5 = vand.u32 (!%p139_p2), %v1241_v1, %v361_v4 }
   0xb   : > { %1193 = vmatprep.subr.bf16.mxu0 (!%p139_p2), %v363_v5  ;;  %1228 = vmatprep.subr.bf16.mxu1 (!%p139_p2), %v363_v5 }
   0xc   : > { %1194 = vmatpush3.bf16.msra.mxu0 (!%p139_p2), %v363_v5  ;;  %1230 = vmatpush3.bf16.msra.mxu1 (!%p139_p2), %v363_v5 }
   0xd   : > { %s1925_s18 = smov (!%p163_p3, %s1068_s18), 63 }
   0xe   : > { %s1069_s19 = sshll.u32 %s1925_s18, 2 }
   0xf   : > { %s1437_s22 = scalar_lea.vmem %s1920_s0, %s1069_s19  ;;  %s1642_s27 = scalar_lea.vmem %s1923_s3, %s1069_s19 }
  0x10   : > { %v1242_v6 = vld [vmem:[%s1437_s22] sm:$0xff]   ;;  %v1244_v8 = vld [vmem:[%s1437_s22 + $0x8] sm:$0xff]   ;;  %v1246_v10 = vld [vmem:[%s1437_s22 + $0x10] sm:$0xff]  }
  0x11   : > { %v1243_v7 = vld [vmem:[%s1437_s22 + $0x40] sm:$0xff]   ;;  %1195 = vmatprep.mubr.msk.bf16.mxu0 %vm309_vm2, %v1242_v6  ;;  %v1245_v9 = vld [vmem:[%s1437_s22 + $0x48] sm:$0xff]   ;;  %v1247_v11 = vld [vmem:[%s1437_s22 + $0x50] sm:$0xff]  }
  0x12   : > { %1211 = vmatprep.mubr.msk.bf16.mxu1 %vm309_vm2, %v1243_v7  ;;  %1196 = vmatmul.mubr.msk.bf16.vlgmr.msra.gmra.mrb[0].mxu0 %vm309_vm2, %v1244_v8  ;;  %v1248_v12 = vld [vmem:[%s1437_s22 + $0x18] sm:$0xff]   ;;  %v1250_v14 = vld [vmem:[%s1437_s22 + $0x20] sm:$0xff]   ;;  %v1252_v16 = vld [vmem:[%s1437_s22 + $0x28] sm:$0xff]  }
  0x13   : > { %1212 = vmatmul.mubr.msk.bf16.vlgmr.msra.gmra.mrb[0].mxu1 %vm309_vm2, %v1245_v9  ;;  %1199 = vmatprep.mubr.msk.bf16.mxu0 %vm309_vm2, %v1246_v10  ;;  %v1249_v13 = vld [vmem:[%s1437_s22 + $0x58] sm:$0xff]   ;;  %v1251_v15 = vld [vmem:[%s1437_s22 + $0x60] sm:$0xff]   ;;  %v1253_v17 = vld [vmem:[%s1437_s22 + $0x68] sm:$0xff]  }
  0x14   : > { %1215 = vmatprep.mubr.msk.bf16.mxu1 %vm309_vm2, %v1247_v11  ;;  %v1254_v18 = vld [vmem:[%s1437_s22 + $0x30] sm:$0xff]   ;;  %v1256_v20 = vld [vmem:[%s1437_s22 + $0x38] sm:$0xff]  }
  0x15   : > { %v1255_v19 = vld [vmem:[%s1437_s22 + $0x70] sm:$0xff]   ;;  %v1257_v21 = vld [vmem:[%s1437_s22 + $0x78] sm:$0xff]  }
  0x1a   : > { %1200 = vmatmul.mubr.msk.bf16.gmra.mrb[4].mxu0 %vm309_vm2, %v1248_v12 }
  0x1b   : > { %1216 = vmatmul.mubr.msk.bf16.gmra.mrb[4].mxu1 %vm309_vm2, %v1249_v13  ;;  %1203 = vmatprep.mubr.msk.bf16.mxu0 %vm309_vm2, %v1250_v14 }
  0x1c   : > { %1219 = vmatprep.mubr.msk.bf16.mxu1 %vm309_vm2, %v1251_v15 }
  0x22   : > { %1204 = vmatmul.mubr.msk.bf16.gmra.mrb[8].mxu0 %vm309_vm2, %v1252_v16 }
  0x23   : > { %1220 = vmatmul.mubr.msk.bf16.gmra.mrb[8].mxu1 %vm309_vm2, %v1253_v17  ;;  %1207 = vmatprep.mubr.msk.bf16.mxu0 %vm309_vm2, %v1254_v18 }
  0x24   : > { %1223 = vmatprep.mubr.msk.bf16.mxu1 %vm309_vm2, %v1255_v19 }
  0x2a   : > { %1208 = vmatmul.mubr.msk.bf16.gmra.mrb[12].mxu0 %vm309_vm2, %v1256_v20 }
  0x2b   : > { %1224 = vmatmul.mubr.msk.bf16.gmra.mrb[12].mxu1 %vm309_vm2, %v1257_v21 }
  0xe5   : > { %v1197_v23 = vpop.f32.mrb[0].mxu0 }
  0xe6   : > { %v1477_v24 = vadd.f32 %v1197_v23, %v1474_v22  ;;  %v1213_v25 = vpop.f32.mrb[0].mxu1  ;;  %v399_v26 = vpop.f32.mrb[1].mxu0 }
  0xe7   : > { %v1480_v27 = vadd.f32 %v1213_v25, %v1474_v22  ;;  %v1483_v28 = vadd.f32 %v1474_v22, %v399_v26  ;;  %v463_v29 = vpop.f32.mrb[1].mxu1  ;;  %v1198_v30 = vpop.f32.mrb[2].mxu0 }
  0xe8   : > { %v528_v31 = vand.u32 2147483647, %v1477_v24  ;;  %v1487_v32 = vadd.f32 %v1474_v22, %v463_v29  ;;  %v1490_v33 = vadd.f32 %v1198_v30, %v1474_v22  ;;  %v1214_v34 = vpop.f32.mrb[2].mxu1  ;;  %v402_v35 = vpop.f32.mrb[3].mxu0  ;;  %vm720_vm3 = vcmp.ge.f32.partialorder %v1477_v24, 0.0 }
  0xe9   : > { %v544_v36 = vand.u32 2147483647, %v1480_v27  ;;  %v526_v37 = vand.u32 2147483647, %v1483_v28  ;;  %v1497_v43 = vadd.f32 %v1214_v34, %v1474_v22  ;;  %v466_v44 = vpop.f32.mrb[3].mxu1  ;;  %v1500_v48 = vadd.f32 %v1474_v22, %v402_v35 }
  0xea   : > { %v560_v38 = vsub.f32 0.0, %v528_v31  ;;  %v542_v39 = vand.u32 2147483647, %v1487_v32  ;;  %v529_v40 = vand.u32 2147483647, %v1490_v33  ;;  %v1504_v52 = vadd.f32 %v1474_v22, %v466_v44 }
  0xeb   : > { %v576_v41 = vsub.f32 0.0, %v544_v36  ;;  %v558_v42 = vsub.f32 0.0, %v526_v37  ;;  %v545_v51 = vand.u32 2147483647, %v1497_v43  ;;  %v527_v57 = vand.u32 2147483647, %v1500_v48 }
  0xec   : > { %v594_v45 = vmul.f32 1.442695, %v560_v38  ;;  %v574_v46 = vsub.f32 0.0, %v542_v39  ;;  %v561_v47 = vsub.f32 0.0, %v529_v40  ;;  %v543_v60 = vand.u32 2147483647, %v1504_v52 }
  0xed   : > { %v626_v49 = vmul.f32 1.442695, %v576_v41  ;;  %v590_v50 = vmul.f32 1.442695, %v558_v42  ;;  %v1201_v55 = vpop.f32.mrb[4].mxu0  ;;  %v577_v56 = vsub.f32 0.0, %v545_v51 }
  0xee   : > { %1258 = vpow2.f32 %v594_v45  ;;  %v622_v53 = vmul.f32 1.442695, %v574_v46  ;;  %v596_v54 = vmul.f32 1.442695, %v561_v47  ;;  %v1217_v58 = vpop.f32.mrb[4].mxu1  ;;  %v415_v59 = vpop.f32.mrb[5].mxu0  ;;  %v1509_v61 = vadd.f32 %v1201_v55, %v1474_v22 }
  0xef   : > { %1260 = vpow2.f32 %v626_v49  ;;  %v479_v62 = vpop.f32.mrb[5].mxu1  ;;  %v1202_v63 = vpop.f32.mrb[6].mxu0  ;;  %v628_v0 = vmul.f32 1.442695, %v577_v56  ;;  %v559_v1 = vsub.f32 0.0, %v527_v57  ;;  %v1512_v2 = vadd.f32 %v1217_v58, %v1474_v22 }
  0xf0   : > { %1262 = vpow2.f32 %v590_v50  ;;  %v1218_v3 = vpop.f32.mrb[6].mxu1  ;;  %v418_v4 = vpop.f32.mrb[7].mxu0  ;;  %v575_v5 = vsub.f32 0.0, %v543_v60  ;;  %v532_v6 = vand.u32 2147483647, %v1509_v61  ;;  %v1517_v12 = vadd.f32 %v1474_v22, %v415_v59 }
  0xf1   : > { %1264 = vpow2.f32 %v622_v53  ;;  %v482_v7 = vpop.f32.mrb[7].mxu1  ;;  %v592_v8 = vmul.f32 1.442695, %v559_v1  ;;  %v548_v9 = vand.u32 2147483647, %v1512_v2  ;;  %v1520_v13 = vadd.f32 %v1474_v22, %v479_v62 }
  0xf2   : > { %1266 = vpow2.f32 %v596_v54  ;;  %v624_v10 = vmul.f32 1.442695, %v575_v5  ;;  %v564_v11 = vsub.f32 0.0, %v532_v6  ;;  %v1523_v15 = vadd.f32 %v1202_v63, %v1474_v22 }
  0xf3   : > { %1268 = vpow2.f32 %v628_v0  ;;  %v580_v14 = vsub.f32 0.0, %v548_v9  ;;  %v530_v18 = vand.u32 2147483647, %v1517_v12  ;;  %v1527_v19 = vadd.f32 %v1218_v3, %v1474_v22 }
  0xf4   : > { %1270 = vpow2.f32 %v592_v8  ;;  %v602_v17 = vmul.f32 1.442695, %v564_v11  ;;  %v546_v23 = vand.u32 2147483647, %v1520_v13  ;;  %v533_v34 = vand.u32 2147483647, %v1523_v15 }
  0xf5   : > { %v1205_v16 = vpop.f32.mrb[8].mxu0  ;;  %1272 = vpow2.f32 %v624_v10  ;;  %v634_v21 = vmul.f32 1.442695, %v580_v14  ;;  %v562_v26 = vsub.f32 0.0, %v530_v18  ;;  %v549_v39 = vand.u32 2147483647, %v1527_v19 }
  0xf6   : > { %v1221_v20 = vpop.f32.mrb[8].mxu1  ;;  %1274 = vpow2.f32 %v602_v17  ;;  %v431_v29 = vpop.f32.mrb[9].mxu0  ;;  %v578_v44 = vsub.f32 0.0, %v546_v23  ;;  %v1550_v45 = vadd.f32 %v1474_v22, %v418_v4  ;;  %v565_v55 = vsub.f32 0.0, %v533_v34 }
  0xf7   : > { %1276 = vpow2.f32 %v634_v21  ;;  %v1536_v35 = vpop.f32.mrb[9].mxu1  ;;  %v1538_v36 = vpop.f32.mrb[10].mxu0  ;;  %v598_v51 = vmul.f32 1.442695, %v562_v26  ;;  %v1567_v59 = vadd.f32 %v1474_v22, %v482_v7  ;;  %v1570_v60 = vadd.f32 %v1205_v16, %v1474_v22 }
  0xf8   : > { %v1530_v25 = vpop.eup %1258  ;;  %v1544_v40 = vpop.f32.mrb[10].mxu1  ;;  %v531_v56 = vand.u32 2147483647, %v1550_v45  ;;  %v630_v1 = vmul.f32 1.442695, %v578_v44  ;;  %v581_v3 = vsub.f32 0.0, %v549_v39  ;;  %v1580_v4 = vadd.f32 %v1221_v20, %v1474_v22 }
  0xf9   : > { %v1532_v30 = vpop.eup %1260  ;;  %v656_v31 = vadd.f32 1.0, %v1530_v25  ;;  %v1552_v46 = vpop.f32.mrb[11].mxu0  ;;  %vm736_vm4 = vcmp.ge.f32.partialorder %v1480_v27, 0.0  ;;  %v547_v10 = vand.u32 2147483647, %v1567_v59  ;;  %vm718_vm5 = vcmp.ge.f32.partialorder %v1483_v28, 0.0 }
  0xfa   : > { %v1540_v37 = vpop.eup %1262  ;;  %v672_v38 = vadd.f32 1.0, %v1532_v30  ;;  %v1554_v47 = vpop.f32.mrb[11].mxu1  ;;  %v563_v9 = vsub.f32 0.0, %v531_v56  ;;  %v536_v17 = vand.u32 2147483647, %v1570_v60  ;;  %v1599_v18 = vadd.f32 %v1474_v22, %v431_v29 }
  0xfb   : > { %v1546_v41 = vpop.eup %1264  ;;  %1278 = vrcp.f32 %v656_v31  ;;  %v654_v42 = vadd.f32 1.0, %v1540_v37  ;;  %vm734_vm7 = vcmp.ge.f32.partialorder %v1487_v32, 0.0  ;;  %v604_v23 = vmul.f32 1.442695, %v565_v55 }
  0xfc   : > { %v1556_v49 = vpop.eup %1266  ;;  %1280 = vrcp.f32 %v672_v38  ;;  %v670_v50 = vadd.f32 1.0, %v1546_v41  ;;  %v579_v26 = vsub.f32 0.0, %v547_v10  ;;  %v552_v31 = vand.u32 2147483647, %v1580_v4 }
  0xfd   : > { %v1559_v53 = vpop.eup %1268  ;;  %1282 = vrcp.f32 %v654_v42  ;;  %v657_v54 = vadd.f32 1.0, %v1556_v49  ;;  %v1563_v57 = vpop.f32.mrb[12].mxu0  ;;  %vm721_vm8 = vcmp.ge.f32.partialorder %v1490_v33, 0.0  ;;  %v636_v38 = vmul.f32 1.442695, %v581_v3 }
  0xfe   : > { %1284 = vrcp.f32 %v670_v50  ;;  %v673_v58 = vadd.f32 1.0, %v1559_v53  ;;  %v1572_v62 = vpop.f32.mrb[12].mxu1  ;;  %v1574_v63 = vpop.f32.mrb[13].mxu0  ;;  %v568_v39 = vsub.f32 0.0, %v536_v17  ;;  %vm737_vm9 = vcmp.ge.f32.partialorder %v1497_v43, 0.0 }
  0xff   : > { %v1576_v0 = vpop.eup %1270  ;;  %1286 = vrcp.f32 %v657_v54  ;;  %v1582_v5 = vpop.f32.mrb[13].mxu1  ;;  %v600_v44 = vmul.f32 1.442695, %v563_v9  ;;  %v584_v50 = vsub.f32 0.0, %v552_v31  ;;  %v632_v54 = vmul.f32 1.442695, %v579_v26 }
 0x100   : > { %v1584_v6 = vpop.f32.mrb[14].mxu0  ;;  %v1586_v7 = vpop.eup %1272  ;;  %1288 = vrcp.f32 %v673_v58  ;;  %v655_v8 = vadd.f32 1.0, %v1576_v0  ;;  %v610_v55 = vmul.f32 1.442695, %v568_v39  ;;  %v534_v56 = vand.u32 2147483647, %v1599_v18 }
 0x101   : > { %v1591_v11 = vpop.f32.mrb[14].mxu1  ;;  %v1593_v14 = vpop.f32.mrb[15].mxu0  ;;  %v671_v16 = vadd.f32 1.0, %v1586_v7  ;;  %1290 = vpow2.f32 %v598_v51  ;;  %vm719_vm10 = vcmp.ge.f32.partialorder %v1500_v48, 0.0  ;;  %v1616_v3 = vmul.f32 1.442695, %v584_v50 }
 0x102   : > { %v1601_v20 = vpop.f32.mrb[15].mxu1  ;;  %v1603_v21 = vpop.eup %1274  ;;  %1292 = vrcp.f32 %v655_v8  ;;  %v1620_v10 = vadd.f32 %v1474_v22, %v1536_v35  ;;  %vm735_vm11 = vcmp.ge.f32.partialorder %v1504_v52, 0.0  ;;  %vm724_vm12 = vcmp.ge.f32.partialorder %v1509_v61, 0.0 }
 0x103   : > { %v1607_v34 = vpop.eup %1276  ;;  %1294 = vrcp.f32 %v671_v16  ;;  %v660_v29 = vadd.f32 1.0, %v1603_v21  ;;  %v566_v16 = vsub.f32 0.0, %v534_v56  ;;  %vm740_vm13 = vcmp.ge.f32.partialorder %v1512_v2, 0.0 }
 0x104   : > { %v676_v42 = vadd.f32 1.0, %v1607_v34  ;;  %1296 = vpow2.f32 %v630_v1  ;;  %v550_v35 = vand.u32 2147483647, %v1620_v10  ;;  %vm722_vm14 = vcmp.ge.f32.partialorder %v1517_v12, 0.0 }
 0x105   : > { %v1279_v51 = vpop.eup %1278  ;;  %1298 = vrcp.f32 %v660_v29  ;;  %vm738_vm15 = vcmp.ge.f32.partialorder %v1520_v13, 0.0  ;;  %vm725_vm0 = vcmp.ge.f32.partialorder %v1523_v15, 0.0  ;;  %vm741_vm1 = vcmp.ge.f32.partialorder %v1527_v19, 0.0 }
 0x106   : > { %v1281_v58 = vpop.eup %1280  ;;  %v752_v8 = vmul.f32 %v1279_v51, %v1530_v25  ;;  %1300 = vrcp.f32 %v676_v42  ;;  %v1626_v25 = vadd.f32 %v1538_v36, %v1474_v22  ;;  %vm723_vm2 = vcmp.ge.f32.partialorder %v1550_v45, 0.0 }
 0x107   : > { %v1283_v1 = vpop.eup %1282  ;;  %v768_v9 = vmul.f32 %v1281_v58, %v1532_v30  ;;  %1302 = vpow2.f32 %v604_v23 }
 0x108   : > { %v1285_v17 = vpop.eup %1284  ;;  %v784_v26 = vsel %vm720_vm3, %v1279_v51, %v752_v8  ;;  %v750_v31 = vmul.f32 %v1283_v1, %v1540_v37  ;;  %1304 = vpow2.f32 %v636_v38  ;;  %vm739_vm3 = vcmp.ge.f32.partialorder %v1567_v59, 0.0 }
 0x109   : > { %v1287_v29 = vpop.eup %1286  ;;  %v816_v30 = vmul.f32 %v784_v26, %v1477_v24  ;;  %v800_v23 = vsel %vm736_vm4, %v1281_v58, %v768_v9  ;;  %v766_v39 = vmul.f32 %v1285_v17, %v1546_v41  ;;  %1306 = vpow2.f32 %v600_v44 }
 0x10a   : > { %v1289_v36 = vpop.eup %1288  ;;  %v832_v37 = vmul.f32 %v800_v23, %v1480_v27  ;;  %v782_v24 = vsel %vm718_vm5, %v1283_v1, %v750_v31  ;;  %v753_v38 = vmul.f32 %v1287_v29, %v1556_v49  ;;  %1308 = vpow2.f32 %v632_v54 }
 0x10b   : > { %v1649_v41 = vpop.eup %1290  ;;  %v1143_v42 = vpack.c.bf16 %v816_v30, %v816_v30  ;;  %v814_v44 = vmul.f32 %v782_v24, %v1483_v28  ;;  %v798_v50 = vsel %vm734_vm7, %v1285_v17, %v766_v39  ;;  %v769_v27 = vmul.f32 %v1289_v36, %v1559_v53 }
 0x10c   : > { %v1293_v51 = vpop.eup %1292  ;;  %v1159_v56 = vpack.c.bf16 %v832_v37, %v832_v37  ;;  %v830_v58 = vmul.f32 %v798_v50, %v1487_v32  ;;  %v785_v49 = vsel %vm721_vm8, %v1287_v29, %v753_v38  ;;  %v658_v54 = vadd.f32 1.0, %v1649_v41 }
 0x10d   : > { %v1295_v8 = vpop.eup %1294  ;;  %977 = vst.msk [vmem:[%s1642_s27 + $0x8] sm:$0xf] %vm974_vm6, %v1143_v42  ;;  %v1141_v1 = vpack.c.bf16 %v814_v44, %v814_v44  ;;  %v817_v28 = vmul.f32 %v785_v49, %v1490_v33  ;;  %v801_v53 = vsel %vm737_vm9, %v1289_v36, %v769_v27  ;;  %v751_v9 = vmul.f32 %v1293_v51, %v1576_v0 }
 0x10e   : > { %v1665_v17 = vpop.eup %1296  ;;  %993 = vst.msk [vmem:[%s1642_s27 + $0x48] sm:$0xf] %vm974_vm6, %v1159_v56  ;;  %v1157_v32 = vpack.c.bf16 %v830_v58, %v830_v58  ;;  %v833_v26 = vmul.f32 %v801_v53, %v1497_v43  ;;  %v767_v31 = vmul.f32 %v1295_v8, %v1586_v7  ;;  %1310 = vrcp.f32 %v658_v54 }
 0x10f   : > { %v1299_v29 = vpop.eup %1298  ;;  %975 = vst.msk [vmem:[%s1642_s27] sm:$0xf] %vm974_vm6, %v1141_v1  ;;  %v1144_v33 = vpack.c.bf16 %v817_v28, %v817_v28  ;;  %v783_v30 = vsel %vm719_vm10, %v1293_v51, %v751_v9  ;;  %v674_v0 = vadd.f32 1.0, %v1665_v17  ;;  %1312 = vpow2.f32 %v610_v55 }
 0x110   : > { %v1301_v23 = vpop.eup %1300  ;;  %991 = vst.msk [vmem:[%s1642_s27 + $0x40] sm:$0xf] %vm974_vm6, %v1157_v32  ;;  %v1160_v39 = vpack.c.bf16 %v833_v26, %v833_v26  ;;  %v815_v43 = vmul.f32 %v783_v30, %v1500_v48  ;;  %v799_v7 = vsel %vm735_vm11, %v1295_v8, %v767_v31  ;;  %v756_v36 = vmul.f32 %v1299_v29, %v1603_v21 }
 0x111   : > { %v1682_v37 = vpop.eup %1302  ;;  %978 = vst.msk [vmem:[%s1642_s27 + $0xc] sm:$0xf] %vm974_vm6, %v1144_v33  ;;  %v831_v24 = vmul.f32 %v799_v7, %v1504_v52  ;;  %v772_v55 = vmul.f32 %v1301_v23, %v1607_v34  ;;  %1314 = vrcp.f32 %v674_v0  ;;  %v606_v38 = vmul.f32 1.442695, %v566_v16 }
 0x112   : > { %v1688_v42 = vpop.eup %1304  ;;  %994 = vst.msk [vmem:[%s1642_s27 + $0x4c] sm:$0xf] %vm974_vm6, %v1160_v39  ;;  %v1142_v48 = vpack.c.bf16 %v815_v43, %v815_v43  ;;  %v788_v21 = vsel %vm724_vm12, %v1299_v29, %v756_v36  ;;  %v661_v44 = vadd.f32 1.0, %v1682_v37  ;;  %1316 = vpow2.f32 %v1616_v3 }
 0x113   : > { %v1696_v50 = vpop.eup %1306  ;;  %v1158_v52 = vpack.c.bf16 %v831_v24, %v831_v24  ;;  %v820_v34 = vmul.f32 %v788_v21, %v1509_v61  ;;  %v804_v16 = vsel %vm740_vm13, %v1301_v23, %v772_v55  ;;  %v677_v27 = vadd.f32 1.0, %v1688_v42 }
 0x114   : > { %v1702_v51 = vpop.eup %1308  ;;  %976 = vst.msk [vmem:[%s1642_s27 + $0x4] sm:$0xf] %vm974_vm6, %v1142_v48  ;;  %v836_v56 = vmul.f32 %v804_v16, %v1512_v2  ;;  %1318 = vrcp.f32 %v661_v44  ;;  %v659_v3 = vadd.f32 1.0, %v1696_v50  ;;  %v582_v58 = vsub.f32 0.0, %v550_v35 }
 0x115   : > { %992 = vst.msk [vmem:[%s1642_s27 + $0x44] sm:$0xf] %vm974_vm6, %v1158_v52  ;;  %v1147_v61 = vpack.c.bf16 %v820_v34, %v820_v34  ;;  %1320 = vrcp.f32 %v677_v27  ;;  %v675_v49 = vadd.f32 1.0, %v1702_v51  ;;  %v537_v2 = vand.u32 2147483647, %v1626_v25 }
 0x116   : > { %v1163_v54 = vpack.c.bf16 %v836_v56, %v836_v56  ;;  %1322 = vrcp.f32 %v659_v3  ;;  %v638_v8 = vmul.f32 1.442695, %v582_v58  ;;  %v1720_v35 = vadd.f32 %v1544_v40, %v1474_v22 }
 0x117   : > { %981 = vst.msk [vmem:[%s1642_s27 + $0x18] sm:$0xf] %vm974_vm6, %v1147_v61  ;;  %1324 = vrcp.f32 %v675_v49  ;;  %v1724_v1 = vadd.f32 %v1474_v22, %v1552_v46  ;;  %v569_v53 = vsub.f32 0.0, %v537_v2  ;;  %v1731_v9 = vadd.f32 %v1474_v22, %v1554_v47 }
 0x118   : > { %v1311_v28 = vpop.eup %1310  ;;  %997 = vst.msk [vmem:[%s1642_s27 + $0x58] sm:$0xf] %vm974_vm6, %v1163_v54  ;;  %1326 = vpow2.f32 %v606_v38  ;;  %v553_v46 = vand.u32 2147483647, %v1720_v35  ;;  %v1742_v33 = vadd.f32 %v1563_v57, %v1474_v22  ;;  %vm728_vm4 = vcmp.ge.f32.partialorder %v1570_v60, 0.0 }
 0x119   : > { %v1733_v32 = vpop.eup %1312  ;;  %v754_v40 = vmul.f32 %v1311_v28, %v1649_v41  ;;  %1328 = vpow2.f32 %v638_v8  ;;  %v612_v31 = vmul.f32 1.442695, %v569_v53  ;;  %v535_v29 = vand.u32 2147483647, %v1724_v1 }
 0x11a   : > { %v664_v26 = vadd.f32 1.0, %v1733_v32  ;;  %v585_v41 = vsub.f32 0.0, %v553_v46  ;;  %v551_v0 = vand.u32 2147483647, %v1731_v9  ;;  %v540_v44 = vand.u32 2147483647, %v1742_v33 }
 0x11b   : > { %v1315_v47 = vpop.eup %1314  ;;  %v786_v30 = vsel %vm722_vm14, %v1311_v28, %v754_v40  ;;  %v567_v7 = vsub.f32 0.0, %v535_v29  ;;  %vm744_vm5 = vcmp.ge.f32.partialorder %v1580_v4, 0.0  ;;  %vm726_vm7 = vcmp.ge.f32.partialorder %v1599_v18, 0.0 }
 0x11c   : > { %v1748_v23 = vpop.eup %1316  ;;  %v818_v39 = vmul.f32 %v786_v30, %v1517_v12  ;;  %v770_v43 = vmul.f32 %v1315_v47, %v1665_v17  ;;  %1330 = vrcp.f32 %v664_v26  ;;  %v644_v36 = vmul.f32 1.442695, %v585_v41 }
 0x11d   : > { %v680_v57 = vadd.f32 1.0, %v1748_v23  ;;  %1332 = vpow2.f32 %v612_v31  ;;  %v583_v24 = vsub.f32 0.0, %v551_v0  ;;  %v608_v21 = vmul.f32 1.442695, %v567_v7 }
 0x11e   : > { %v1319_v55 = vpop.eup %1318  ;;  %v1145_v38 = vpack.c.bf16 %v818_v39, %v818_v39  ;;  %v802_v48 = vsel %vm738_vm15, %v1315_v47, %v770_v43  ;;  %v572_v56 = vsub.f32 0.0, %v540_v44  ;;  %v1796_v30 = vadd.f32 %v1474_v22, %v1582_v5 }
 0x11f   : > { %v1321_v52 = vpop.eup %1320  ;;  %v834_v12 = vmul.f32 %v802_v48, %v1520_v13  ;;  %v757_v17 = vmul.f32 %v1319_v55, %v1682_v37  ;;  %1334 = vrcp.f32 %v680_v57  ;;  %v640_v34 = vmul.f32 1.442695, %v583_v24 }
 0x120   : > { %v1323_v16 = vpop.eup %1322  ;;  %979 = vst.msk [vmem:[%s1642_s27 + $0x10] sm:$0xf] %vm974_vm6, %v1145_v38  ;;  %v773_v27 = vmul.f32 %v1321_v52, %v1688_v42  ;;  %1336 = vpow2.f32 %v644_v36  ;;  %v618_v53 = vmul.f32 1.442695, %v572_v56  ;;  %v1823_v44 = vadd.f32 %v1584_v6, %v1474_v22 }
 0x121   : > { %v1325_v3 = vpop.eup %1324  ;;  %v1161_v58 = vpack.c.bf16 %v834_v12, %v834_v12  ;;  %v789_v61 = vsel %vm725_vm0, %v1319_v55, %v757_v17  ;;  %v755_v13 = vmul.f32 %v1323_v16, %v1696_v50  ;;  %1338 = vpow2.f32 %v608_v21 }
 0x122   : > { %v1765_v37 = vpop.eup %1326  ;;  %v821_v49 = vmul.f32 %v789_v61, %v1523_v15  ;;  %v805_v54 = vsel %vm741_vm1, %v1321_v52, %v773_v27  ;;  %v771_v42 = vmul.f32 %v1325_v3, %v1702_v51  ;;  %1340 = vpow2.f32 %v640_v34 }
 0x123   : > { %v1771_v8 = vpop.eup %1328  ;;  %995 = vst.msk [vmem:[%s1642_s27 + $0x50] sm:$0xf] %vm974_vm6, %v1161_v58  ;;  %v837_v2 = vmul.f32 %v805_v54, %v1527_v19  ;;  %v787_v50 = vsel %vm723_vm2, %v1323_v16, %v755_v13  ;;  %v662_v28 = vadd.f32 1.0, %v1765_v37  ;;  %v1786_v19 = vadd.f32 %v1572_v62, %v1474_v22 }
 0x124   : > { %v1148_v15 = vpack.c.bf16 %v821_v49, %v821_v49  ;;  %v819_v40 = vmul.f32 %v787_v50, %v1550_v45  ;;  %v803_v51 = vsel %vm739_vm3, %v1325_v3, %v771_v42  ;;  %v678_v46 = vadd.f32 1.0, %v1771_v8 }
 0x125   : > { %v1164_v26 = vpack.c.bf16 %v837_v2, %v837_v2  ;;  %v835_v31 = vmul.f32 %v803_v51, %v1567_v59  ;;  %1342 = vrcp.f32 %v662_v28  ;;  %v1792_v45 = vadd.f32 %v1474_v22, %v1574_v63 }
 0x126   : > { %v1331_v29 = vpop.eup %1330  ;;  %982 = vst.msk [vmem:[%s1642_s27 + $0x1c] sm:$0xf] %vm974_vm6, %v1148_v15  ;;  %v1146_v47 = vpack.c.bf16 %v819_v40, %v819_v40  ;;  %1344 = vrcp.f32 %v678_v46  ;;  %v556_v0 = vand.u32 2147483647, %v1786_v19  ;;  %v541_v6 = vand.u32 2147483647, %v1823_v44 }
 0x127   : > { %v1798_v59 = vpop.eup %1332  ;;  %998 = vst.msk [vmem:[%s1642_s27 + $0x5c] sm:$0xf] %vm974_vm6, %v1164_v26  ;;  %v1162_v62 = vpack.c.bf16 %v835_v31, %v835_v31  ;;  %v760_v41 = vmul.f32 %v1331_v29, %v1733_v32  ;;  %1346 = vpow2.f32 %v618_v53  ;;  %v538_v39 = vand.u32 2147483647, %v1792_v45 }
 0x128   : > { %980 = vst.msk [vmem:[%s1642_s27 + $0x14] sm:$0xf] %vm974_vm6, %v1146_v47  ;;  %v665_v63 = vadd.f32 1.0, %v1798_v59  ;;  %v588_v7 = vsub.f32 0.0, %v556_v0  ;;  %v554_v32 = vand.u32 2147483647, %v1796_v30  ;;  %v1835_v3 = vadd.f32 %v1591_v11, %v1474_v22 }
 0x129   : > { %v1335_v5 = vpop.eup %1334  ;;  %996 = vst.msk [vmem:[%s1642_s27 + $0x54] sm:$0xf] %vm974_vm6, %v1162_v62  ;;  %v792_v43 = vsel %vm728_vm4, %v1331_v29, %v760_v41  ;;  %v570_v55 = vsub.f32 0.0, %v538_v39  ;;  %v1843_v13 = vadd.f32 %v1474_v22, %v1601_v20  ;;  %v573_v42 = vsub.f32 0.0, %v541_v6 }
 0x12a   : > { %v1813_v57 = vpop.eup %1336  ;;  %v824_v36 = vmul.f32 %v792_v43, %v1570_v60  ;;  %v776_v24 = vmul.f32 %v1335_v5, %v1748_v23  ;;  %1348 = vrcp.f32 %v665_v63  ;;  %v586_v21 = vsub.f32 0.0, %v554_v32 }
 0x12b   : > { %v1817_v38 = vpop.eup %1338  ;;  %v681_v48 = vadd.f32 1.0, %v1813_v57  ;;  %v650_v17 = vmul.f32 1.442695, %v588_v7  ;;  %v614_v27 = vmul.f32 1.442695, %v570_v55  ;;  %vm742_vm8 = vcmp.ge.f32.partialorder %v1620_v10, 0.0 }
 0x12c   : > { %v1825_v52 = vpop.eup %1340  ;;  %v1151_v12 = vpack.c.bf16 %v824_v36, %v824_v36  ;;  %v808_v60 = vsel %vm744_vm5, %v1335_v5, %v776_v24  ;;  %v663_v23 = vadd.f32 1.0, %v1817_v38  ;;  %v646_v56 = vmul.f32 1.442695, %v586_v21 }
 0x12d   : > { %v840_v34 = vmul.f32 %v808_v60, %v1580_v4  ;;  %1350 = vrcp.f32 %v681_v48  ;;  %v679_v16 = vadd.f32 1.0, %v1825_v52  ;;  %v1839_v4 = vadd.f32 %v1474_v22, %v1593_v14 }
 0x12e   : > { %985 = vst.msk [vmem:[%s1642_s27 + $0x28] sm:$0xf] %vm974_vm6, %v1151_v12  ;;  %1352 = vrcp.f32 %v663_v23  ;;  %v557_v2 = vand.u32 2147483647, %v1835_v3  ;;  %vm729_vm9 = vcmp.ge.f32.partialorder %v1626_v25, 0.0  ;;  %vm745_vm10 = vcmp.ge.f32.partialorder %v1720_v35, 0.0 }
 0x12f   : > { %v1343_v58 = vpop.eup %1342  ;;  %v1167_v61 = vpack.c.bf16 %v840_v34, %v840_v34  ;;  %1354 = vrcp.f32 %v679_v16  ;;  %v539_v50 = vand.u32 2147483647, %v1839_v4  ;;  %vm727_vm11 = vcmp.ge.f32.partialorder %v1724_v1, 0.0 }
 0x130   : > { %v1345_v49 = vpop.eup %1344  ;;  %v758_v54 = vmul.f32 %v1343_v58, %v1765_v37  ;;  %1356 = vpow2.f32 %v650_v17  ;;  %v620_v37 = vmul.f32 1.442695, %v573_v42  ;;  %v589_v15 = vsub.f32 0.0, %v557_v2 }
 0x131   : > { %v1847_v11 = vpop.eup %1346  ;;  %1001 = vst.msk [vmem:[%s1642_s27 + $0x68] sm:$0xf] %vm974_vm6, %v1167_v61  ;;  %v774_v14 = vmul.f32 %v1345_v49, %v1771_v8  ;;  %1358 = vpow2.f32 %v614_v27  ;;  %v571_v40 = vsub.f32 0.0, %v539_v50  ;;  %v555_v8 = vand.u32 2147483647, %v1843_v13 }
 0x132   : > { %v790_v22 = vsel %vm726_vm7, %v1343_v58, %v758_v54  ;;  %v668_v20 = vadd.f32 1.0, %v1847_v11  ;;  %1360 = vpow2.f32 %v646_v56  ;;  %v652_v29 = vmul.f32 1.442695, %v589_v15 }
 0x133   : > { %v822_v28 = vmul.f32 %v790_v22, %v1599_v18  ;;  %v806_v53 = vsel %vm742_vm8, %v1345_v49, %v774_v14  ;;  %v616_v18 = vmul.f32 1.442695, %v571_v40  ;;  %v587_v62 = vsub.f32 0.0, %v555_v8 }
 0x134   : > { %v1349_v51 = vpop.eup %1348  ;;  %v838_v46 = vmul.f32 %v806_v53, %v1620_v10  ;;  %1362 = vrcp.f32 %v668_v20  ;;  %vm743_vm12 = vcmp.ge.f32.partialorder %v1731_v9, 0.0  ;;  %vm732_vm13 = vcmp.ge.f32.partialorder %v1742_v33, 0.0 }
 0x135   : > { %v1149_v26 = vpack.c.bf16 %v822_v28, %v822_v28  ;;  %v761_v31 = vmul.f32 %v1349_v51, %v1798_v59  ;;  %1364 = vpow2.f32 %v620_v37  ;;  %v648_v59 = vmul.f32 1.442695, %v587_v62 }
 0x136   : > { %v1165_v47 = vpack.c.bf16 %v838_v46, %v838_v46  ;;  %1366 = vpow2.f32 %v652_v29  ;;  %vm748_vm14 = vcmp.ge.f32.partialorder %v1786_v19, 0.0  ;;  %vm730_vm15 = vcmp.ge.f32.partialorder %v1792_v45, 0.0 }
 0x137   : > { %v1351_v41 = vpop.eup %1350  ;;  %983 = vst.msk [vmem:[%s1642_s27 + $0x20] sm:$0xf] %vm974_vm6, %v1149_v26  ;;  %v793_v0 = vsel %vm729_vm9, %v1349_v51, %v761_v31  ;;  %1368 = vpow2.f32 %v616_v18  ;;  %vm746_vm0 = vcmp.ge.f32.partialorder %v1796_v30, 0.0  ;;  %vm733_vm1 = vcmp.ge.f32.partialorder %v1823_v44, 0.0 }
 0x138   : > { %v1353_v10 = vpop.eup %1352  ;;  %999 = vst.msk [vmem:[%s1642_s27 + $0x60] sm:$0xf] %vm974_vm6, %v1165_v47  ;;  %v825_v63 = vmul.f32 %v793_v0, %v1626_v25  ;;  %v777_v39 = vmul.f32 %v1351_v41, %v1813_v57  ;;  %1370 = vpow2.f32 %v648_v59  ;;  %vm749_vm2 = vcmp.ge.f32.partialorder %v1835_v3, 0.0 }
 0x139   : > { %v1355_v5 = vpop.eup %1354  ;;  %v759_v43 = vmul.f32 %v1353_v10, %v1817_v38  ;;  %vm731_vm3 = vcmp.ge.f32.partialorder %v1839_v4, 0.0  ;;  %vm747_vm4 = vcmp.ge.f32.partialorder %v1843_v13, 0.0 }
 0x13a   : > { %v1357_v7 = vpop.eup %1356  ;;  %v1152_v32 = vpack.c.bf16 %v825_v63, %v825_v63  ;;  %v809_v36 = vsel %vm745_vm10, %v1351_v41, %v777_v39  ;;  %v775_v24 = vmul.f32 %v1355_v5, %v1825_v52 }
 0x13b   : > { %v1359_v55 = vpop.eup %1358  ;;  %v841_v25 = vmul.f32 %v809_v36, %v1720_v35  ;;  %v791_v57 = vsel %vm727_vm11, %v1353_v10, %v759_v43  ;;  %v684_v48 = vadd.f32 1.0, %v1357_v7 }
 0x13c   : > { %v1361_v21 = vpop.eup %1360  ;;  %986 = vst.msk [vmem:[%s1642_s27 + $0x2c] sm:$0xf] %vm974_vm6, %v1152_v32  ;;  %v823_v38 = vmul.f32 %v791_v57, %v1724_v1  ;;  %v807_v12 = vsel %vm743_vm12, %v1355_v5, %v775_v24  ;;  %v666_v60 = vadd.f32 1.0, %v1359_v55 }
 0x13d   : > { %v1168_v23 = vpack.c.bf16 %v841_v25, %v841_v25  ;;  %v839_v52 = vmul.f32 %v807_v12, %v1731_v9  ;;  %1372 = vrcp.f32 %v684_v48  ;;  %v682_v17 = vadd.f32 1.0, %v1361_v21 }
 0x13e   : > { %v1363_v35 = vpop.eup %1362  ;;  %v1150_v34 = vpack.c.bf16 %v823_v38, %v823_v38  ;;  %1374 = vrcp.f32 %v666_v60 }
 0x13f   : > { %v1365_v16 = vpop.eup %1364  ;;  %1002 = vst.msk [vmem:[%s1642_s27 + $0x6c] sm:$0xf] %vm974_vm6, %v1168_v23  ;;  %v1166_v27 = vpack.c.bf16 %v839_v52, %v839_v52  ;;  %v764_v56 = vmul.f32 %v1363_v35, %v1847_v11  ;;  %1376 = vrcp.f32 %v682_v17 }
 0x140   : > { %984 = vst.msk [vmem:[%s1642_s27 + $0x24] sm:$0xf] %vm974_vm6, %v1150_v34  ;;  %v669_v1 = vadd.f32 1.0, %v1365_v16  ;;  %v1367_v6 = vpop.eup %1366 }
 0x141   : > { %1000 = vst.msk [vmem:[%s1642_s27 + $0x64] sm:$0xf] %vm974_vm6, %v1166_v27  ;;  %v796_v9 = vsel %vm732_vm13, %v1363_v35, %v764_v56  ;;  %v1369_v58 = vpop.eup %1368  ;;  %v685_v49 = vadd.f32 1.0, %v1367_v6 }
 0x142   : > { %v828_v61 = vmul.f32 %v796_v9, %v1742_v33  ;;  %1378 = vrcp.f32 %v669_v1  ;;  %v667_v54 = vadd.f32 1.0, %v1369_v58  ;;  %v1371_v42 = vpop.eup %1370 }
 0x143   : > { %1380 = vrcp.f32 %v685_v49  ;;  %v683_v11 = vadd.f32 1.0, %v1371_v42 }
 0x144   : > { %v1155_v2 = vpack.c.bf16 %v828_v61, %v828_v61  ;;  %1382 = vrcp.f32 %v667_v54 }
 0x145   : > { %1384 = vrcp.f32 %v683_v11 }
 0x146   : > { %989 = vst.msk [vmem:[%s1642_s27 + $0x38] sm:$0xf] %vm974_vm6, %v1155_v2 }
 0x147   : > { %v1373_v14 = vpop.eup %1372 }
 0x148   : > { %v1375_v50 = vpop.eup %1374  ;;  %v780_v22 = vmul.f32 %v1373_v14, %v1357_v7 }
 0x149   : > { %v1377_v20 = vpop.eup %1376  ;;  %v762_v37 = vmul.f32 %v1375_v50, %v1359_v55 }
 0x14a   : > { %v812_v28 = vsel %vm748_vm14, %v1373_v14, %v780_v22  ;;  %v778_v33 = vmul.f32 %v1377_v20, %v1361_v21 }
 0x14b   : > { %v844_v53 = vmul.f32 %v812_v28, %v1786_v19  ;;  %v794_v15 = vsel %vm730_vm15, %v1375_v50, %v762_v37 }
 0x14c   : > { %v1379_v40 = vpop.eup %1378  ;;  %v826_v51 = vmul.f32 %v794_v15, %v1792_v45  ;;  %v810_v46 = vsel %vm746_vm0, %v1377_v20, %v778_v33 }
 0x14d   : > { %v1171_v8 = vpack.c.bf16 %v844_v53, %v844_v53  ;;  %v842_v26 = vmul.f32 %v810_v46, %v1796_v30  ;;  %v765_v31 = vmul.f32 %v1379_v40, %v1365_v16  ;;  %v1381_v29 = vpop.eup %1380 }
 0x14e   : > { %v1153_v47 = vpack.c.bf16 %v826_v51, %v826_v51  ;;  %v1383_v18 = vpop.eup %1382  ;;  %v781_v41 = vmul.f32 %v1381_v29, %v1367_v6 }
 0x14f   : > { %1005 = vst.msk [vmem:[%s1642_s27 + $0x78] sm:$0xf] %vm974_vm6, %v1171_v8  ;;  %v1169_v19 = vpack.c.bf16 %v842_v26, %v842_v26  ;;  %v797_v62 = vsel %vm733_vm1, %v1379_v40, %v765_v31  ;;  %v763_v0 = vmul.f32 %v1383_v18, %v1369_v58  ;;  %v1385_v30 = vpop.eup %1384 }
 0x150   : > { %987 = vst.msk [vmem:[%s1642_s27 + $0x30] sm:$0xf] %vm974_vm6, %v1153_v47  ;;  %v829_v45 = vmul.f32 %v797_v62, %v1823_v44  ;;  %v813_v10 = vsel %vm749_vm2, %v1381_v29, %v781_v41  ;;  %v779_v5 = vmul.f32 %v1385_v30, %v1371_v42 }
 0x151   : > { %1003 = vst.msk [vmem:[%s1642_s27 + $0x70] sm:$0xf] %vm974_vm6, %v1169_v19  ;;  %v845_v39 = vmul.f32 %v813_v10, %v1835_v3  ;;  %v795_v59 = vsel %vm731_vm3, %v1383_v18, %v763_v0 }
 0x152   : > { %v1156_v63 = vpack.c.bf16 %v829_v45, %v829_v45  ;;  %v827_v43 = vmul.f32 %v795_v59, %v1839_v4  ;;  %v811_v7 = vsel %vm747_vm4, %v1385_v30, %v779_v5 }
 0x153   : > { %v1172_v44 = vpack.c.bf16 %v845_v39, %v845_v39  ;;  %v843_v36 = vmul.f32 %v811_v7, %v1843_v13 }
 0x154   : > { %990 = vst.msk [vmem:[%s1642_s27 + $0x3c] sm:$0xf] %vm974_vm6, %v1156_v63  ;;  %v1154_v32 = vpack.c.bf16 %v827_v43, %v827_v43 }
 0x155   : > { %1006 = vst.msk [vmem:[%s1642_s27 + $0x7c] sm:$0xf] %vm974_vm6, %v1172_v44  ;;  %v1170_v24 = vpack.c.bf16 %v843_v36, %v843_v36 }
 0x156   : > { %988 = vst.msk [vmem:[%s1642_s27 + $0x34] sm:$0xf] %vm974_vm6, %v1154_v32 }
 0x157   : > { %1004 = vst.msk [vmem:[%s1642_s27 + $0x74] sm:$0xf] %vm974_vm6, %v1170_v24 }
 0x158 PF: > { %s13_s12 = sadd.s32 1, %s1392_s12  }
 0x159   : > { %p10_p4 = scmp.ge.s32.totalorder %s13_s12, 4  }
 0x15b   :  { %12 = sbr.rel (!%p10_p4) target bundleno = 1 (0x1), region = 62 }

</bundles_post_ra>
